<compile_context>
chip_gen: v6e
topology: v6e:2x2x1
jax: 0.10.0
libtpu: 0.0.40
codegen_flags: <defaults>
</compile_context>

<pallas_src>
import jax
import jax.numpy as jnp
from jax.experimental import pallas as pl
from jax.experimental.pallas import tpu as pltpu


def _round_up(x, m):
    return ((x + m - 1) // m) * m


def _cdiv(a, b):
    return (a + b - 1) // b


# ---------------------------------------------------------------------------
# Shared math helpers (run inside kernels).
# ---------------------------------------------------------------------------
def _score_slab(x, w):
    """Lane-dense Linear(D->1) of a row tile on the MXU: (1,D)x(tm,D)->(1,tm)."""
    return jax.lax.dot_general(
        w, x, (((1,), (1,)), ((), ())), preferred_element_type=jnp.float32)


def _bag_softmax(scores, seg, num_bags):
    """Per-bag stable softmax over a lane-dense (1, n_pad) score row.

    seg: (1, n_pad) int32 bag id per instance; -1 marks padding lanes (these
    never enter any reduction -- they are masked out by select, so garbage
    scores from ragged feature tiles are harmless).
    """
    n_pad = scores.shape[-1]
    # (num_bags, n_pad) one-hot bag membership, built in-register.
    bag_ids = jax.lax.broadcasted_iota(jnp.int32, (num_bags, n_pad), 0)
    member = bag_ids == seg                                      # (B, Np)

    # Per-bag max, broadcast back per instance through the one-hot mask.
    masked = jnp.where(member, scores, -jnp.inf)                 # (B, Np)
    bag_max = jnp.max(masked, axis=-1, keepdims=True)            # (B, 1)
    m_i = jnp.sum(jnp.where(member, bag_max, 0.0),
                  axis=0, keepdims=True)                         # (1, Np)

    # One exp per instance; per-bag sum broadcast back the same way.
    e = jnp.exp(scores - m_i)                                    # (1, Np)
    bag_sum = jnp.sum(jnp.where(member, e, 0.0),
                      axis=-1, keepdims=True)                    # (B, 1)
    denom = jnp.sum(jnp.where(member, bag_sum, 0.0),
                    axis=0, keepdims=True)                       # (1, Np)
    denom = jnp.where(denom > 0.0, denom, 1.0)    # padding lanes / empty bags

    # EUP approx reciprocal (free slot) + one Newton step -> ~f32 accuracy.
    r = pl.reciprocal(denom, approx=True)
    r = r * (2.0 - denom * r)
    return e * r


# ---------------------------------------------------------------------------
# Kernels.
# ---------------------------------------------------------------------------
def _make_fused_kernel(num_bags):
    """Single-step fused kernel: scores + per-bag softmax in one launch."""
    def kernel(seg_ref, x_ref, w_ref, out_ref):
        s = _score_slab(x_ref[...], w_ref[...])          # (1, n_pad) f32
        out_ref[...] = _bag_softmax(s, seg_ref[...], num_bags)
    return kernel


def _scores_kernel(x_ref, w_ref, s_ref):
    # x: (tm, D) native dtype, w: (1, D) native dtype, s: (1, tm) f32
    s_ref[...] = _score_slab(x_ref[...], w_ref[...])


def _make_bag_softmax_kernel(num_bags):
    def kernel(seg_ref, s_ref, out_ref):
        out_ref[...] = _bag_softmax(s_ref[...], seg_ref[...], num_bags)
    return kernel


# ---------------------------------------------------------------------------
# Wrapper.
# ---------------------------------------------------------------------------
# Features fitting in this budget are handled by the fused single-launch path
# (block + small extras stays far below every generation's scoped-VMEM
# default, including v5e's 16 MiB even with double-buffered allocation).
_FUSED_FEATURE_BYTES = 4 * 1024 * 1024
# Per-feature-buffer byte budget for the tiled (two-call) path; with double
# buffering this keeps the pipeline under 16 MiB scoped VMEM on v5e and leaves
# ample headroom on v6e (32/128 MiB) and v7x (32/64 MiB).
_TILE_FEATURE_BYTES = 2 * 1024 * 1024


def default_attention_module(features, bag_sizes, weight, bias=None, *,
                             tile_rows=None):
    """features: (N, D) float (bf16/f32); bag_sizes: (num_bags,) int32 of
    contiguous bag lengths summing to N; weight: (1, D); bias: accepted for
    API parity but unused (the returned per-bag softmax is shift-invariant, so
    the Linear bias cancels exactly).  Returns (N, 1) float32 attention.

    tile_rows: optional override forcing the two-call row-tiled path with the
    given tile height (multiple of 128); mainly for testing / manual tuning.
    """
    del bias  # Softmax shift-invariance: the Linear bias cancels exactly.
    N, D = features.shape
    num_bags = int(bag_sizes.shape[0])
    dtype_bytes = jnp.dtype(features.dtype).itemsize

    # Guard against inconsistent bag_sizes (only when concretely available).
    try:
        total = int(jnp.sum(bag_sizes))
    except jax.errors.ConcretizationTypeError:
        total = None
    if total is not None and total != N:
        raise ValueError(f"sum(bag_sizes)={total} does not match N={N}")

    n_full = _round_up(N, 128)  # lane-aligned score-row length for N rows

    use_fused = (tile_rows is None
                 and n_full * D * dtype_bytes <= _FUSED_FEATURE_BYTES)

    if use_fused:
        tm = n_full
        num_tiles = 1
        n_pad = n_full
    else:
        if tile_rows is not None:
            tm = tile_rows
        else:
            tm = max(128, (_TILE_FEATURE_BYTES
                           // max(D * dtype_bytes, 1)) // 128 * 128)
            tm = min(tm, 4096)
            tm = min(tm, n_full)
        if tm % 128 != 0:
            raise ValueError("tile_rows must be a multiple of 128")
        num_tiles = _cdiv(N, tm)
        n_pad = num_tiles * tm

    # Tiny (1, D) weight row; match feature dtype so the MXU sees one dtype.
    w = weight.reshape(1, D).astype(features.dtype)

    # Lane-packed per-instance bag ids; padded lanes get -1 (never matched),
    # which also neutralizes the garbage scores of ragged feature tiles.
    seg = jnp.full((n_pad,), -1, dtype=jnp.int32)
    seg = seg.at[:N].set(
        jnp.repeat(jnp.arange(num_bags, dtype=jnp.int32), bag_sizes,
                   total_repeat_length=N))
    seg = seg.reshape(1, n_pad)

    cost = pl.CostEstimate(
        flops=2 * N * D + 8 * num_bags * n_pad,
        transcendentals=n_pad,
        bytes_accessed=N * D * dtype_bytes + D * dtype_bytes + 2 * n_pad * 4)

    if use_fused:
        # Fused path: one launch, the score row never round-trips HBM.
        attn = pl.pallas_call(
            _make_fused_kernel(num_bags),
            out_shape=jax.ShapeDtypeStruct((1, n_pad), jnp.float32),
            grid=(1,),
            in_specs=[
                pl.BlockSpec((1, n_pad), lambda i: (0, 0)),   # segment ids
                pl.BlockSpec((tm, D), lambda i: (0, 0)),      # features (ragged ok)
                pl.BlockSpec((1, D), lambda i: (0, 0)),       # linear weight
            ],
            out_specs=pl.BlockSpec((1, n_pad), lambda i: (0, 0)),
            compiler_params=pltpu.CompilerParams(
                dimension_semantics=("arbitrary",)),
            cost_estimate=cost,
        )(seg, features, w)
    else:
        # Two-call path: HBM-bound, pipelined scores pass kept "parallel" so
        # v7x can shard the row tiles across its 2 TensorCores.
        scores = pl.pallas_call(
            _scores_kernel,
            out_shape=jax.ShapeDtypeStruct((1, n_pad), jnp.float32),
            grid=(num_tiles,),
            in_specs=[
                pl.BlockSpec((tm, D), lambda i: (i, 0)),      # feature row tile
                pl.BlockSpec((1, D), lambda i: (0, 0)),       # weight (resident)
            ],
            out_specs=pl.BlockSpec((1, tm), lambda i: (0, i)),
            compiler_params=pltpu.CompilerParams(
                dimension_semantics=("parallel",)),
            cost_estimate=cost,
        )(features, w)

        # TODO(synk): for very large num_bags * n_pad, switch this one-shot
        # membership-mask softmax to a per-bag grid with scalar-prefetched bag
        # offsets; it is negligible at realistic MIL sizes (scores are only N
        # floats).
        attn = pl.pallas_call(
            _make_bag_softmax_kernel(num_bags),
            out_shape=jax.ShapeDtypeStruct((1, n_pad), jnp.float32),
            grid=(1,),
            in_specs=[
                pl.BlockSpec((1, n_pad), lambda i: (0, 0)),   # segment ids
                pl.BlockSpec((1, n_pad), lambda i: (0, 0)),   # scores
            ],
            out_specs=pl.BlockSpec((1, n_pad), lambda i: (0, 0)),
            compiler_params=pltpu.CompilerParams(
                dimension_semantics=("arbitrary",)),
        )(seg, scores)

    return attn[0, :N].reshape(N, 1)


# ---------------------------------------------------------------------------
# Pure-JAX reference and demo.
# ---------------------------------------------------------------------------
def _reference(features, bag_sizes_list, weight, bias):
    w = weight.reshape(1, -1).astype(features.dtype)
    scores = jnp.dot(features, w.T, preferred_element_type=jnp.float32)
    scores = scores + bias.reshape(()).astype(jnp.float32)       # (N, 1)
    outs, start = [], 0
    for bs in bag_sizes_list:
        outs.append(jax.nn.softmax(scores[start:start + bs], axis=0))
        start += bs
    return jnp.concatenate(outs, axis=0)


if __name__ == "__main__":
    # TODO(synk): only the default configuration (hidden_dims=(), i.e. no
    # BatchNorm1d / ReLU hidden stack) is implemented.
    key = jax.random.PRNGKey(0)

    configs = [
        # (N, D, bag sizes, feature dtype, tile_rows override, atol)
        (8,   32, [3, 5],                jnp.float32,  None, 1e-5),  # fused, tiny
        (300, 64, [100, 50, 150],        jnp.bfloat16, None, 5e-3),  # fused, bf16, ragged
        (520, 32, [130, 200, 64, 126],   jnp.float32,  128,  1e-5),  # two-call, ragged tile
    ]

    for idx, (N, D, bags, dt, tile_rows, atol) in enumerate(configs):
        key, kx, kw, kb = jax.random.split(key, 4)
        features = jax.random.normal(kx, (N, D), dtype=jnp.float32).astype(dt)
        bag_sizes = jnp.array(bags, dtype=jnp.int32)

        # nn.Linear(D, 1) init: U(-1/sqrt(D), 1/sqrt(D)) for weight and bias.
        bound = 1.0 / jnp.sqrt(jnp.float32(D))
        weight = jax.random.uniform(kw, (1, D), jnp.float32, -bound, bound)
        bias = jax.random.uniform(kb, (1, 1), jnp.float32, -bound, bound)

        out = default_attention_module(features, bag_sizes, weight, bias,
                                       tile_rows=tile_rows)
        out = jax.block_until_ready(out)

        ref = _reference(features, bags, weight, bias)
        assert out.shape == (N, 1)
        assert jnp.allclose(out, ref, atol=atol, rtol=atol), \
            f"config {idx} mismatch vs reference"

    print("KERNEL_OK")
</pallas_src>

<mosaic_0001>
module attributes {stable_mosaic.version = 11 : i64} {
  func.func @kernel(%arg0: i32, %arg1: memref<1x128xi32, #tpu.memory_space<vmem>>, %arg2: memref<128x32xf32, #tpu.memory_space<vmem>>, %arg3: memref<1x32xf32, #tpu.memory_space<vmem>>, %arg4: memref<1x128xf32, #tpu.memory_space<vmem>>) attributes {dimension_semantics = [#tpu.dimension_semantics<arbitrary>], iteration_bounds = array<i64: 1>, scalar_prefetch = 0 : i64, scratch_operands = 0 : i64, tpu.core_type = #tpu.core_type<tc>, window_params = [{pipeline_mode = #tpu.pipeline_mode<synchronous>, transform_indices = @transform_0, window_bounds = array<i64: 1, 128>}, {transform_indices = @transform_1, window_bounds = array<i64: 128, 32>}, {pipeline_mode = #tpu.pipeline_mode<synchronous>, transform_indices = @transform_2, window_bounds = array<i64: 1, 32>}, {pipeline_mode = #tpu.pipeline_mode<synchronous>, transform_indices = @transform_3, window_bounds = array<i64: 1, 128>}]} {
    %c0 = arith.constant 0 : index
    %c0_0 = arith.constant 0 : index
    %0 = vector.load %arg2[%c0, %c0_0] : memref<128x32xf32, #tpu.memory_space<vmem>>, vector<128x32xf32>
    %c0_1 = arith.constant 0 : index
    %c0_2 = arith.constant 0 : index
    %1 = vector.load %arg3[%c0_1, %c0_2] : memref<1x32xf32, #tpu.memory_space<vmem>>, vector<1x32xf32>
    %cst = arith.constant dense<0.000000e+00> : vector<1x128xf32>
    %2 = tpu.matmul %1, %0, %cst {dimension_numbers = #tpu.dot_dimension_numbers<[1], [1], [0], [0], [0, 0, 1, 0], [], []>} : vector<1x32xf32>, vector<128x32xf32>, vector<1x128xf32> -> vector<1x128xf32>
    %c0_3 = arith.constant 0 : index
    %c0_4 = arith.constant 0 : index
    %3 = vector.load %arg1[%c0_3, %c0_4] : memref<1x128xi32, #tpu.memory_space<vmem>>, vector<1x128xi32>
    %4 = tpu.iota {dimensions = array<i32: 0>} : vector<2x128xi32>
    %5 = vector.broadcast %3 : vector<1x128xi32> to vector<2x128xi32>
    %6 = arith.cmpi eq, %4, %5 : vector<2x128xi32>
    %cst_5 = arith.constant 0xFF800000 : f32
    %7 = vector.shape_cast %2 : vector<1x128xf32> to vector<1x128xf32>
    %8 = vector.broadcast %7 : vector<1x128xf32> to vector<2x128xf32>
    %9 = vector.broadcast %cst_5 : f32 to vector<2x128xf32>
    %10 = arith.select %6, %8, %9 : vector<2x128xi1>, vector<2x128xf32>
    %cst_6 = arith.constant dense<0xFF800000> : vector<2xf32>
    %11 = vector.multi_reduction <maximumf>, %10, %cst_6 [1] : vector<2x128xf32> to vector<2xf32>
    %12 = vector.shape_cast %11 : vector<2xf32> to vector<2x1xf32>
    %cst_7 = arith.constant 0.000000e+00 : f32
    %13 = vector.shape_cast %12 : vector<2x1xf32> to vector<2x1xf32>
    %14 = vector.broadcast %13 : vector<2x1xf32> to vector<2x128xf32>
    %15 = vector.broadcast %cst_7 : f32 to vector<2x128xf32>
    %16 = arith.select %6, %14, %15 : vector<2x128xi1>, vector<2x128xf32>
    %cst_8 = arith.constant dense<0.000000e+00> : vector<128xf32>
    %17 = vector.multi_reduction <add>, %16, %cst_8 [0] : vector<2x128xf32> to vector<128xf32>
    %18 = vector.shape_cast %17 : vector<128xf32> to vector<1x128xf32>
    %19 = arith.subf %2, %18 : vector<1x128xf32>
    %20 = math.exp %19 : vector<1x128xf32>
    %cst_9 = arith.constant 0.000000e+00 : f32
    %21 = vector.shape_cast %20 : vector<1x128xf32> to vector<1x128xf32>
    %22 = vector.broadcast %21 : vector<1x128xf32> to vector<2x128xf32>
    %23 = vector.broadcast %cst_9 : f32 to vector<2x128xf32>
    %24 = arith.select %6, %22, %23 : vector<2x128xi1>, vector<2x128xf32>
    %cst_10 = arith.constant dense<0.000000e+00> : vector<2xf32>
    %25 = vector.multi_reduction <add>, %24, %cst_10 [1] : vector<2x128xf32> to vector<2xf32>
    %26 = vector.shape_cast %25 : vector<2xf32> to vector<2x1xf32>
    %cst_11 = arith.constant 0.000000e+00 : f32
    %27 = vector.shape_cast %26 : vector<2x1xf32> to vector<2x1xf32>
    %28 = vector.broadcast %27 : vector<2x1xf32> to vector<2x128xf32>
    %29 = vector.broadcast %cst_11 : f32 to vector<2x128xf32>
    %30 = arith.select %6, %28, %29 : vector<2x128xi1>, vector<2x128xf32>
    %cst_12 = arith.constant dense<0.000000e+00> : vector<128xf32>
    %31 = vector.multi_reduction <add>, %30, %cst_12 [0] : vector<2x128xf32> to vector<128xf32>
    %32 = vector.shape_cast %31 : vector<128xf32> to vector<1x128xf32>
    %cst_13 = arith.constant 0.000000e+00 : f32
    %33 = vector.broadcast %cst_13 : f32 to vector<1x128xf32>
    %34 = arith.cmpf ogt, %32, %33 : vector<1x128xf32>
    %cst_14 = arith.constant 1.000000e+00 : f32
    %35 = vector.broadcast %cst_14 : f32 to vector<1x128xf32>
    %36 = arith.select %34, %32, %35 : vector<1x128xi1>, vector<1x128xf32>
    %37 = tpu.reciprocal %36 {approx = true} : vector<1x128xf32> -> vector<1x128xf32>
    %38 = arith.mulf %36, %37 : vector<1x128xf32>
    %cst_15 = arith.constant 2.000000e+00 : f32
    %39 = vector.broadcast %cst_15 : f32 to vector<1x128xf32>
    %40 = arith.subf %39, %38 : vector<1x128xf32>
    %41 = arith.mulf %37, %40 : vector<1x128xf32>
    %42 = arith.mulf %20, %41 : vector<1x128xf32>
    %c0_16 = arith.constant 0 : index
    %c0_17 = arith.constant 0 : index
    %43 = vector.load %arg4[%c0_16, %c0_17] : memref<1x128xf32, #tpu.memory_space<vmem>>, vector<1x128xf32>
    tpu.vector_store %arg4[%c0_16, %c0_17], %42 {strides = array<i32>} : memref<1x128xf32, #tpu.memory_space<vmem>>, vector<1x128xf32>,
    return
  }
  func.func @transform_0(%arg0: i32) -> (i32, i32) {
    %c0_i32 = arith.constant 0 : i32
    %c0_i32_0 = arith.constant 0 : i32
    %c0_i32_1 = arith.constant 0 : i32
    return %c0_i32, %c0_i32_0 : i32, i32
  }
  func.func @transform_1(%arg0: i32) -> (i32, i32) {
    %c0_i32 = arith.constant 0 : i32
    %c0_i32_0 = arith.constant 0 : i32
    %c0_i32_1 = arith.constant 0 : i32
    return %c0_i32, %c0_i32_0 : i32, i32
  }
  func.func @transform_2(%arg0: i32) -> (i32, i32) {
    %c0_i32 = arith.constant 0 : i32
    %c0_i32_0 = arith.constant 0 : i32
    %c0_i32_1 = arith.constant 0 : i32
    return %c0_i32, %c0_i32_0 : i32, i32
  }
  func.func @transform_3(%arg0: i32) -> (i32, i32) {
    %c0_i32 = arith.constant 0 : i32
    %c0_i32_0 = arith.constant 0 : i32
    %c0_i32_1 = arith.constant 0 : i32
    return %c0_i32, %c0_i32_0 : i32, i32
  }
}

</mosaic_0001>

<bundles_post_ra>
// kernel: tpu_custom_call.1
= control target key start
LH: loop header
LB: loop body
LE: loop exit
PB: predicated region body
PF: predicated region fallthrough
CT: control target
= control target key end

     0   :  { %8 = vsyncpa [#allocation3], 0  ;;  %s459_s0 = inlined_call_operand.hbm [shape: s32[1,128], index: 0, kind: input, shape index: {}]   ;;  %s460_s1 = inlined_call_operand.hbm [shape: f32[8,32], index: 1, kind: input, shape index: {}]   ;;  %s461_s2 = inlined_call_operand.vmem [shape: f32[1,32], index: 2, kind: input, shape index: {}]   ;;  %s462_s3 = inlined_call_operand.hbm [shape: f32[1,128], index: 3, kind: output, shape index: {}]  }
   0x1   :  { %9 = vsyncpa [#allocation6], 0 }
   0x2   :  { %10 = vsyncpa [#allocation4], 0  ;;  %s395_s12 = smov [#allocation2]  }
   0x3   :  { %s17_s13 = sshll.u32 %s395_s12, 4  ;;  %s18_s13 = int_to_ptr.vmem [resolvable:$true] %s17_s13 }
   0x4   :  { %s337_s14 = scalar_lea.vmem %s18_s13, 16  ;;  %s341_s15 = scalar_lea.vmem %s18_s13, 32 }
   0x5   :  { %p338_p0 = scmp.ne.s32.totalorder %s18_s13, %s337_s14  ;;  %p342_p1 = scmp.lt.s32.totalorder %s18_s13, %s18_s13 }
   0x6   :  { %p343_p2 = scmp.lt.s32.totalorder %s341_s15, %s337_s14 }
   0x8   :  { %p344_p3 = por %p343_p2, %p342_p1 }
   0xa   :  { %p345_p4 = pnand %p344_p3, %p338_p0 }
   0xc   :  { %348 = shalt.err (!%p345_p4)
}
   0xd   :  { %20 = dma.hbm_to_vmem [thread:$0]  %s459_s0, 16, %s18_s13, [#allocation3]  }
   0xe   :  { %25 = vsyncadd [#allocation6], 1920  ;;  %s396_s18 = smov [#allocation5]  }
   0xf   :  { %s26_s19 = sshll.u32 %s396_s18, 4  ;;  %s27_s19 = int_to_ptr.vmem [resolvable:$true] %s26_s19 }
  0x10   :  { %s357_s20 = scalar_lea.vmem %s27_s19, 128  ;;  %s361_s21 = scalar_lea.vmem %s27_s19, 2048 }
  0x11   :  { %p358_p5 = scmp.ne.s32.totalorder %s27_s19, %s357_s20  ;;  %p362_p6 = scmp.lt.s32.totalorder %s27_s19, %s27_s19 }
  0x12   :  { %p363_p7 = scmp.lt.s32.totalorder %s361_s21, %s357_s20 }
  0x14   :  { %p364_p8 = por %p363_p7, %p362_p6 }
  0x16   :  { %p365_p9 = pnand %p364_p8, %p358_p5 }
  0x18   :  { %368 = shalt.err (!%p365_p9)
}
  0x19   :  { %s397_s22 = smov 128   ;;  %s398_s23 = smov 8  }
  0x1a   :  { %32 = dma.hbm_to_vmem [thread:$0]  %s460_s1, 128, %s27_s19, [#allocation6], %s397_s22, %s397_s22, %s398_s23  }
  0x1b   :  { %389 = dma.done.wait [#allocation3], 16  }
  0x1c   :  { %390 = vsyncadd [#allocation3], 4294967280 }
  0x1d   :  { %391 = dma.done.wait [#allocation6], 2048  }
  0x1e   :  { %392 = vsyncadd [#allocation6], 4294965248  ;;  %v399_v0 = vmov 0.0   ;;  %vm400_vm0 = vmmov 0   ;;  %vm58_vm1 = vcmask 261120   ;;  %v56_v1 = vld [vmem:[#allocation5 + $0x78] sm:$0xff]  ;;  %v181_v18 = vlaneseq }
  0x1f   :  { %283 = vmatprep.subr.mxu0 %v399_v0  ;;  %315 = vmatprep.mubr.msk.f32.mxu0 %vm400_vm0, %v399_v0  ;;  %v55_v2 = vld [vmem:[#allocation5 + $0x70] sm:$0xff]  ;;  %v54_v3 = vld [vmem:[#allocation5 + $0x68] sm:$0xff]  ;;  %v53_v4 = vld [vmem:[#allocation5 + $0x60] sm:$0xff]  ;;  %vm193_vm3 = vcmask 1041408  }
  0x20   :  { %284 = vmatpush3.xpose.msk.msra.mxu0 %vm58_vm1, %v56_v1  ;;  %v52_v5 = vld [vmem:[#allocation5 + $0x58] sm:$0xff]  ;;  %v51_v6 = vld [vmem:[#allocation5 + $0x50] sm:$0xff]  ;;  %v50_v7 = vld [vmem:[#allocation5 + $0x48] sm:$0xff]  ;;  %v182_v19 = vshrl.u32 %v181_v18, 7 }
  0x21   :  { %285 = vmatprep.subr.mxu0 %v399_v0  ;;  %v49_v8 = vld [vmem:[#allocation5 + $0x40] sm:$0xff]  ;;  %v48_v9 = vld [vmem:[#allocation5 + $0x38] sm:$0xff]  ;;  %v47_v10 = vld [vmem:[#allocation5 + $0x30] sm:$0xff] }
  0x22   :  { %v46_v11 = vld [vmem:[#allocation5 + $0x28] sm:$0xff]  ;;  %v45_v12 = vld [vmem:[#allocation5 + $0x20] sm:$0xff]  ;;  %v44_v13 = vld [vmem:[#allocation5 + $0x18] sm:$0xff]  ;;  %v190_v20 = vsub.s32 0, %v182_v19 }
  0x23   :  { %v43_v14 = vld [vmem:[#allocation5 + $0x10] sm:$0xff]  ;;  %v42_v15 = vld [vmem:[#allocation5 + $0x8] sm:$0xff]  ;;  %v41_v16 = vld [vmem:[#allocation5] sm:$0xff] }
  0x24   :  { %286 = vmatpush3.xpose.msk.msra.mxu0 %vm58_vm1, %v55_v2  ;;  %v57_v17 = vld [vmem:[%s461_s2] sm:$0x1]  ;;  %s401_s2 = smov [#allocation7]  }
  0x25   :  { %287 = vmatprep.subr.mxu0 %v399_v0  ;;  %v265_v21 = vld [vmem:[#allocation2] ss:$0 sm:$0xff]  ;;  %s238_s26 = sshll.u32 %s401_s2, 4  ;;  %s239_s26 = int_to_ptr.vmem [resolvable:$true] %s238_s26 }
  0x26   :  { %vm187_vm2 = vcmp.eq.s32.totalorder %v182_v19, %v265_v21  ;;  %s369_s27 = scalar_lea.vmem %s239_s26, 16  ;;  %s373_s28 = scalar_lea.vmem %s239_s26, 32 }
  0x27   :  { %p370_p10 = scmp.ne.s32.totalorder %s239_s26, %s369_s27  ;;  %p374_p11 = scmp.lt.s32.totalorder %s239_s26, %s239_s26 }
  0x28   :  { %288 = vmatpush3.xpose.msk.msra.mxu0 %vm58_vm1, %v54_v3  ;;  %p375_p12 = scmp.lt.s32.totalorder %s373_s28, %s369_s27 }
  0x29   :  { %289 = vmatprep.subr.mxu0 %v399_v0 }
  0x2a   :  { %p376_p13 = por %p375_p12, %p374_p11 }
  0x2c   :  { %290 = vmatpush3.xpose.msk.msra.mxu0 %vm58_vm1, %v53_v4  ;;  %p377_p0 = pnand %p376_p13, %p370_p10 }
  0x2d   :  { %291 = vmatprep.subr.mxu0 %v399_v0 }
  0x30   :  { %292 = vmatpush3.xpose.msk.msra.mxu0 %vm58_vm1, %v52_v5 }
  0x31   :  { %293 = vmatprep.subr.mxu0 %v399_v0 }
  0x34   :  { %294 = vmatpush3.xpose.msk.msra.mxu0 %vm58_vm1, %v51_v6 }
  0x35   :  { %295 = vmatprep.subr.mxu0 %v399_v0 }
  0x38   :  { %296 = vmatpush3.xpose.msk.msra.mxu0 %vm58_vm1, %v50_v7 }
  0x39   :  { %297 = vmatprep.subr.mxu0 %v399_v0 }
  0x3c   :  { %298 = vmatpush3.xpose.msk.msra.mxu0 %vm58_vm1, %v49_v8 }
  0x3d   :  { %299 = vmatprep.subr.mxu0 %v399_v0 }
  0x40   :  { %300 = vmatpush3.xpose.msk.msra.mxu0 %vm58_vm1, %v48_v9 }
  0x41   :  { %301 = vmatprep.subr.mxu0 %v399_v0 }
  0x44   :  { %302 = vmatpush3.xpose.msk.msra.mxu0 %vm58_vm1, %v47_v10 }
  0x45   :  { %303 = vmatprep.subr.mxu0 %v399_v0 }
  0x48   :  { %304 = vmatpush3.xpose.msk.msra.mxu0 %vm58_vm1, %v46_v11 }
  0x49   :  { %305 = vmatprep.subr.mxu0 %v399_v0 }
  0x4c   :  { %306 = vmatpush3.xpose.msk.msra.mxu0 %vm58_vm1, %v45_v12 }
  0x4d   :  { %307 = vmatprep.subr.mxu0 %v399_v0 }
  0x50   :  { %308 = vmatpush3.xpose.msk.msra.mxu0 %vm58_vm1, %v44_v13 }
  0x51   :  { %309 = vmatprep.subr.mxu0 %v399_v0 }
  0x54   :  { %310 = vmatpush3.xpose.msk.msra.mxu0 %vm58_vm1, %v43_v14 }
  0x55   :  { %311 = vmatprep.subr.mxu0 %v399_v0 }
  0x58   :  { %312 = vmatpush3.xpose.msk.msra.mxu0 %vm58_vm1, %v42_v15 }
  0x59   :  { %313 = vmatprep.subr.mxu0 %v399_v0 }
  0x5c   :  { %314 = vmatpush3.xpose.msk.msra.mxu0 %vm58_vm1, %v41_v16 }
  0x5f   :  { %316 = vmatmul.mubr.msk.f32.vlgmr.msra.gmra.mxu0 %vm58_vm1, %v57_v17 }
 0x11f   :  { %v176_v22 = vpop.f32.mrf.mxu0 }
 0x120   :  { %v191_v23 = vrot.slane %v176_v22, %v190_v20 }
 0x121   :  { %v317_v24 = vpop.f32.mrf.mxu0 }
 0x122   :  { %v192_v25 = vsel %vm187_vm2, %v191_v23, -inf }
 0x123   :  { %v194_v26 = vsel %vm193_vm3, %v192_v25, -inf }
 0x124   :  { %195 = vmax.xlane.f32.xlu0 %v194_v26 }
 0x1ad   :  { %v196_v27 = vpop.xlane.xlu0 %195 }
 0x1ae   :  { %v197_v28 = vsel %vm187_vm2, %v196_v27, 0.0 }
 0x1af   :  { %v198_v29 = vsel %vm193_vm3, %v197_v28, 0.0 }
 0x1b0   :  { %v199_v30 = vrot.slane %v198_v29, 4 }
 0x1b2   :  { %v200_v31 = vadd.f32 %v199_v30, %v198_v29 }
 0x1b4   :  { %v201_v32 = vrot.slane %v200_v31, 2 }
 0x1b6   :  { %v202_v33 = vadd.f32 %v201_v32, %v200_v31 }
 0x1b8   :  { %v203_v34 = vrot.slane %v202_v33, 1 }
 0x1ba   :  { %v204_v35 = vadd.f32 %v203_v34, %v202_v33 }
 0x1bc   :  { %v205_v36 = vsub.f32 %v176_v22, %v204_v35 }
 0x1be   :  { %v206_v37 = vmul.f32 1.442695, %v205_v36 }
 0x1c0   :  { %325 = vpow2.f32 %v206_v37 }
 0x1cd   :  { %v326_v38 = vpop.eup %325 }
 0x1ce   :  { %v211_v39 = vrot.slane %v326_v38, %v190_v20 }
 0x1d0   :  { %v212_v40 = vsel %vm187_vm2, %v211_v39, 0.0 }
 0x1d1   :  { %v213_v41 = vsel %vm193_vm3, %v212_v40, 0.0 }
 0x1d2   :  { %214 = vadd.xlane.f32.xlu0 %v213_v41 }
 0x25b   :  { %v215_v42 = vpop.xlane.xlu0 %214 }
 0x25c   :  { %v216_v43 = vsel %vm187_vm2, %v215_v42, 0.0 }
 0x25d   :  { %v217_v44 = vsel %vm193_vm3, %v216_v43, 0.0 }
 0x25e   :  { %v218_v45 = vrot.slane %v217_v44, 4 }
 0x260   :  { %v219_v46 = vadd.f32 %v218_v45, %v217_v44 }
 0x262   :  { %v220_v47 = vrot.slane %v219_v46, 2 }
 0x264   :  { %v221_v48 = vadd.f32 %v220_v47, %v219_v46 }
 0x266   :  { %v222_v49 = vrot.slane %v221_v48, 1 }
 0x268   :  { %v223_v50 = vadd.f32 %v222_v49, %v221_v48 }
 0x26a   :  { %vm224_vm4 = vcmp.gt.f32.partialorder %v223_v50, 0.0 }
 0x26b   :  { %v225_v51 = vsel %vm224_vm4, %v223_v50, 1.0 }
 0x26c   :  { %327 = vrcp.f32 %v225_v51 }
 0x279   :  { %v328_v52 = vpop.eup %327 }
 0x27a   :  { %v227_v53 = vmul.f32 %v328_v52, %v225_v51 }
 0x27c   :  { %v228_v54 = vsub.f32 2.0, %v227_v53 }
 0x27e   :  { %v229_v55 = vmul.f32 %v328_v52, %v228_v54 }
 0x280   :  { %v230_v56 = vmul.f32 %v326_v38, %v229_v55 }
 0x282   :  { %231 = vst [vmem:[#allocation7] sm:$0x1] %v230_v56 }
 0x283   :  { %380 = shalt.err (!%p377_p0)
}
 0x284   :  { %241 = dma.vmem_to_hbm [thread:$0]  %s239_s26, 16, %s462_s3, [#allocation4]  }
 0x285   :  { %393 = dma.done.wait [#allocation4], 16  }
 0x286   :  { %394 = vsyncadd [#allocation4], 4294967280 }
 0x287   :  { %245 = vsyncpa [#allocation3], 1 }
 0x288   :  { %246 = vsyncpa [#allocation6], 1 }
 0x289   :  { %247 = vsyncpa [#allocation4], 1 }

</bundles_post_ra>
